<compile_context>
chip_gen: v7x
topology: tpu7x:2x2x1
jax: 0.10.0
libtpu: 0.0.40
codegen_flags: <defaults>
</compile_context>

<pallas_src>
import functools
import math

import jax
import jax.numpy as jnp
from jax import lax
from jax.experimental import pallas as pl
from jax.experimental.pallas import tpu as pltpu


def _attention_kernel(x_ref, wqkv_ref, wo_ref, cos_ref, sin_ref, o_ref, *,
                      n_heads):
    """Fused attention forward for one batch element.

    x_ref:    (1, S, D)  bf16   current batch element
    wqkv_ref: (D, 3D)    bf16   fused [wq | wk | wv]^T; wq/wk columns are in
                                the rotate-half layout, wq carries 1/sqrt(hd)
    wo_ref:   (D, D)     bf16   wo^T (original layout)
    cos_ref:  (S, D//2)  f32    RoPE cos table (rotate-half layout)
    sin_ref:  (S, D//2)  f32    RoPE sin table (rotate-half layout)
    o_ref:    (1, S, D)  f32    output
    """
    f32 = jnp.float32
    bf16 = jnp.bfloat16

    xb = x_ref[0]                                    # (S, D) bf16
    S, D = xb.shape
    hd = D // n_heads
    half = hd // 2
    Dh = D // 2

    # Fused Q/K/V projection: one (S,D) x (D,3D) MXU matmul, f32 accumulation.
    qkv = jnp.dot(xb, wqkv_ref[...], preferred_element_type=f32)   # (S, 3D)
    q = qkv[:, :D]
    k = qkv[:, D:2 * D]
    v = qkv[:, 2 * D:]

    # RoPE in rotate-half layout: q = [q_even | q_odd].  Pure VPU math in f32.
    cos = cos_ref[...]
    sin = sin_ref[...]
    q1, q2 = q[:, :Dh], q[:, Dh:]
    k1, k2 = k[:, :Dh], k[:, Dh:]
    qr1 = (q1 * cos - q2 * sin).astype(bf16)         # rotated "real" parts
    qr2 = (q2 * cos + q1 * sin).astype(bf16)         # rotated "imag" parts
    kr1 = (k1 * cos - k2 * sin).astype(bf16)
    kr2 = (k2 * cos + k1 * sin).astype(bf16)
    vb = v.astype(bf16)
    wo = wo_ref[...]

    dn = (((1,), (1,)), ((), ()))   # contract last dims: (S,h)x(S,h) -> (S,S)

    acc = jnp.zeros((S, D), f32)
    # Static unroll over heads (n_heads is small here).  For large n_heads /
    # long S this loop should become a grid axis with KV tiling.
    for h in range(n_heads):
        a, b = h * half, (h + 1) * half
        lo = h * hd
        # Scores already carry the 1/sqrt(hd) scale (folded into wq).
        sc = (lax.dot_general(qr1[:, a:b], kr1[:, a:b], dn,
                              preferred_element_type=f32)
              + lax.dot_general(qr2[:, a:b], kr2[:, a:b], dn,
                                preferred_element_type=f32))        # (S, S)
        m = jnp.max(sc, axis=-1, keepdims=True)
        p = jnp.exp(sc - m)
        inv_l = pl.reciprocal(jnp.sum(p, axis=-1, keepdims=True), approx=True)
        out_h = jnp.dot(p.astype(bf16), vb[:, lo:lo + hd],
                        preferred_element_type=f32) * inv_l         # (S, hd)
        acc = acc + jnp.dot(out_h.astype(bf16), wo[lo:lo + hd, :],
                            preferred_element_type=f32)
    o_ref[0] = acc.astype(o_ref.dtype)


def attention_forward(x, wq, wk, wv, wo, *, n_heads, rope_theta=10000.0):
    """Pallas equivalent of Attention(dim, n_heads).forward(x).

    x: (B, S, D) float32; wq/wk/wv/wo: (D, D) float32, PyTorch Linear (out,in).
    """
    B, S, D = x.shape
    assert D % n_heads == 0, "dim must be divisible by n_heads"
    hd = D // n_heads
    assert hd % 2 == 0, "head_dim must be even for RoPE"
    half = hd // 2
    f32 = jnp.float32
    bf16 = jnp.bfloat16

    # Global rotate-half permutation of q/k output features:
    #   perm[c]       = h*hd + 2*j       with c = h*half + j,  c <  D/2
    #   perm[D/2 + c] = h*hd + 2*j + 1
    # Same permutation on q and k keeps every per-head score contraction
    # (and therefore the full forward pass) unchanged; v / wo untouched.
    c = jnp.arange(D // 2)
    h_idx = c // half
    j_idx = c % half
    perm = jnp.concatenate([h_idx * hd + 2 * j_idx,
                            h_idx * hd + 2 * j_idx + 1])

    scale = 1.0 / math.sqrt(hd)
    wq_t = wq.T.astype(f32)[:, perm] * scale   # fold softmax scale into wq
    wk_t = wk.T.astype(f32)[:, perm]
    wv_t = wv.T.astype(f32)
    wqkv = jnp.concatenate([wq_t, wk_t, wv_t], axis=1).astype(bf16)  # (D, 3D)
    wo_t = wo.T.astype(bf16)

    # RoPE tables in rotate-half layout: (S, D/2), same per-pair angle reused
    # for both halves, tiled across heads.
    freqs = 1.0 / (rope_theta ** (jnp.arange(0, hd, 2, dtype=f32) / hd))
    ang = jnp.arange(S, dtype=f32)[:, None] * freqs[None, :]         # (S, half)
    cos_t = jnp.tile(jnp.cos(ang), (1, n_heads))                     # (S, D/2)
    sin_t = jnp.tile(jnp.sin(ang), (1, n_heads))

    x_bf = x.astype(bf16)

    kernel = functools.partial(_attention_kernel, n_heads=n_heads)

    # Advisory cost estimate for the XLA scheduler.
    flops = B * (8 * S * D * D + 4 * S * S * D)
    bytes_accessed = (2 * B * S * D + 4 * B * S * D
                      + 2 * (3 * D * D + D * D) + 4 * S * D)
    cost = pl.CostEstimate(flops=flops,
                           transcendentals=B * n_heads * S * (S + 1),
                           bytes_accessed=bytes_accessed)

    const2 = lambda b: (0, 0)

    out = pl.pallas_call(
        kernel,
        out_shape=jax.ShapeDtypeStruct((B, S, D), x.dtype),
        grid_spec=pltpu.PrefetchScalarGridSpec(
            num_scalar_prefetch=0,
            grid=(B,),
            in_specs=[
                pl.BlockSpec((1, S, D), lambda b: (b, 0, 0)),   # x
                pl.BlockSpec((D, 3 * D), const2),               # wqkv (resident)
                pl.BlockSpec((D, D), const2),                   # wo^T (resident)
                pl.BlockSpec((S, D // 2), const2),              # cos  (resident)
                pl.BlockSpec((S, D // 2), const2),              # sin  (resident)
            ],
            out_specs=pl.BlockSpec((1, S, D), lambda b: (b, 0, 0)),
        ),
        compiler_params=pltpu.CompilerParams(
            dimension_semantics=("parallel",),   # batch axis -> both TCs
            # vmem_limit_bytes left at default: resident footprint here is
            # tiny; raise it explicitly for production D.
        ),
        cost_estimate=cost,
    )(x_bf, wqkv, wo_t, cos_t, sin_t)
    return out


# ----------------------------- pure-JAX reference ---------------------------

def _rope_ref(x4, cos, sin):
    """x4: (B, S, H, hd); cos/sin: (S, hd//2) -- torch interleaved convention."""
    B, S, H, hd = x4.shape
    xp = x4.reshape(B, S, H, hd // 2, 2)
    xr, xi = xp[..., 0], xp[..., 1]
    cc = cos[None, :, None, :]
    ss = sin[None, :, None, :]
    out_r = xr * cc - xi * ss
    out_i = xr * ss + xi * cc
    return jnp.stack([out_r, out_i], axis=-1).reshape(B, S, H, hd)


def attention_reference(x, wq, wk, wv, wo, n_heads, rope_theta=10000.0):
    B, S, D = x.shape
    hd = D // n_heads
    q = (x @ wq.T).reshape(B, S, n_heads, hd)
    k = (x @ wk.T).reshape(B, S, n_heads, hd)
    v = (x @ wv.T).reshape(B, S, n_heads, hd)
    freqs = 1.0 / (rope_theta ** (jnp.arange(0, hd, 2, dtype=jnp.float32) / hd))
    ang = jnp.arange(S, dtype=jnp.float32)[:, None] * freqs[None, :]
    q = _rope_ref(q, jnp.cos(ang), jnp.sin(ang))
    k = _rope_ref(k, jnp.cos(ang), jnp.sin(ang))
    scores = jnp.einsum('bthd,bThd->bhtT', q, k) / math.sqrt(hd)
    attn = jax.nn.softmax(scores, axis=-1)
    out = jnp.einsum('bhtT,bThd->bthd', attn, v).reshape(B, S, D)
    return out @ wo.T


if __name__ == "__main__":
    # Small shapes consistent with the module: dim=32, n_heads=4 -> head_dim=8.
    batch, seq, dim, n_heads = 2, 8, 32, 4
    theta = 10000.0

    key = jax.random.PRNGKey(0)
    kx, kq, kk, kv, ko = jax.random.split(key, 5)
    w_scale = 1.0 / math.sqrt(dim)
    x = jax.random.normal(kx, (batch, seq, dim), dtype=jnp.float32)
    wq = jax.random.normal(kq, (dim, dim), dtype=jnp.float32) * w_scale
    wk = jax.random.normal(kk, (dim, dim), dtype=jnp.float32) * w_scale
    wv = jax.random.normal(kv, (dim, dim), dtype=jnp.float32) * w_scale
    wo = jax.random.normal(ko, (dim, dim), dtype=jnp.float32) * w_scale

    out = attention_forward(x, wq, wk, wv, wo, n_heads=n_heads, rope_theta=theta)
    out = jax.block_until_ready(out)

    ref = attention_reference(x, wq, wk, wv, wo, n_heads, rope_theta=theta)
    assert out.shape == (batch, seq, dim), out.shape
    # Tolerance reflects bf16 MXU inputs (f32 accumulation); a layout/RoPE bug
    # would produce O(1) errors and still fail this check.
    assert jnp.allclose(out, ref, atol=5e-2, rtol=5e-2), (
        "mismatch vs reference attention: max abs diff = "
        f"{float(jnp.max(jnp.abs(out - ref)))}")

    print("KERNEL_OK")
</pallas_src>

<mosaic_0001>
module attributes {stable_mosaic.version = 11 : i64} {
  func.func @_attention_kernel(%arg0: i32, %arg1: memref<1x8x32xbf16, #tpu.memory_space<vmem>>, %arg2: memref<32x96xbf16, #tpu.memory_space<vmem>>, %arg3: memref<32x32xbf16, #tpu.memory_space<vmem>>, %arg4: memref<8x16xf32, #tpu.memory_space<vmem>>, %arg5: memref<8x16xf32, #tpu.memory_space<vmem>>, %arg6: memref<1x8x32xf32, #tpu.memory_space<vmem>>) attributes {dimension_semantics = [#tpu.dimension_semantics<parallel>], iteration_bounds = array<i64: 2>, scalar_prefetch = 0 : i64, scratch_operands = 0 : i64, tpu.core_type = #tpu.core_type<tc>, window_params = [{transform_indices = @transform_0, window_bounds = array<i64: 1, 8, 32>}, {pipeline_mode = #tpu.pipeline_mode<synchronous>, transform_indices = @transform_1, window_bounds = array<i64: 32, 96>}, {pipeline_mode = #tpu.pipeline_mode<synchronous>, transform_indices = @transform_2, window_bounds = array<i64: 32, 32>}, {pipeline_mode = #tpu.pipeline_mode<synchronous>, transform_indices = @transform_3, window_bounds = array<i64: 8, 16>}, {pipeline_mode = #tpu.pipeline_mode<synchronous>, transform_indices = @transform_4, window_bounds = array<i64: 8, 16>}, {transform_indices = @transform_5, window_bounds = array<i64: 1, 8, 32>}]} {
    %c0 = arith.constant 0 : index
    %c0_0 = arith.constant 0 : index
    %c0_1 = arith.constant 0 : index
    %0 = vector.load %arg1[%c0, %c0_0, %c0_1] : memref<1x8x32xbf16, #tpu.memory_space<vmem>>, vector<1x8x32xbf16>
    %1 = vector.shape_cast %0 : vector<1x8x32xbf16> to vector<8x32xbf16>
    %c0_2 = arith.constant 0 : index
    %c0_3 = arith.constant 0 : index
    %2 = vector.load %arg2[%c0_2, %c0_3] : memref<32x96xbf16, #tpu.memory_space<vmem>>, vector<32x96xbf16>
    %cst = arith.constant dense<0.000000e+00> : vector<8x96xf32>
    %3 = tpu.matmul %1, %2, %cst {dimension_numbers = #tpu.dot_dimension_numbers<[1], [0], [0], [1], [0, 0, 1, 1], [], []>} : vector<8x32xbf16>, vector<32x96xbf16>, vector<8x96xf32> -> vector<8x96xf32>
    %4 = vector.extract_strided_slice %3 {offsets = [0, 0], sizes = [8, 32], strides = [1, 1]} : vector<8x96xf32> to vector<8x32xf32>
    %5 = vector.extract_strided_slice %3 {offsets = [0, 32], sizes = [8, 32], strides = [1, 1]} : vector<8x96xf32> to vector<8x32xf32>
    %6 = vector.extract_strided_slice %3 {offsets = [0, 64], sizes = [8, 32], strides = [1, 1]} : vector<8x96xf32> to vector<8x32xf32>
    %c0_4 = arith.constant 0 : index
    %c0_5 = arith.constant 0 : index
    %7 = vector.load %arg4[%c0_4, %c0_5] : memref<8x16xf32, #tpu.memory_space<vmem>>, vector<8x16xf32>
    %c0_6 = arith.constant 0 : index
    %c0_7 = arith.constant 0 : index
    %8 = vector.load %arg5[%c0_6, %c0_7] : memref<8x16xf32, #tpu.memory_space<vmem>>, vector<8x16xf32>
    %9 = vector.extract_strided_slice %4 {offsets = [0, 0], sizes = [8, 16], strides = [1, 1]} : vector<8x32xf32> to vector<8x16xf32>
    %10 = vector.extract_strided_slice %4 {offsets = [0, 16], sizes = [8, 16], strides = [1, 1]} : vector<8x32xf32> to vector<8x16xf32>
    %11 = vector.extract_strided_slice %5 {offsets = [0, 0], sizes = [8, 16], strides = [1, 1]} : vector<8x32xf32> to vector<8x16xf32>
    %12 = vector.extract_strided_slice %5 {offsets = [0, 16], sizes = [8, 16], strides = [1, 1]} : vector<8x32xf32> to vector<8x16xf32>
    %13 = arith.mulf %9, %7 : vector<8x16xf32>
    %14 = arith.mulf %10, %8 : vector<8x16xf32>
    %15 = arith.subf %13, %14 : vector<8x16xf32>
    %16 = arith.truncf %15 : vector<8x16xf32> to vector<8x16xbf16>
    %17 = arith.mulf %10, %7 : vector<8x16xf32>
    %18 = arith.mulf %9, %8 : vector<8x16xf32>
    %19 = arith.addf %17, %18 : vector<8x16xf32>
    %20 = arith.truncf %19 : vector<8x16xf32> to vector<8x16xbf16>
    %21 = arith.mulf %11, %7 : vector<8x16xf32>
    %22 = arith.mulf %12, %8 : vector<8x16xf32>
    %23 = arith.subf %21, %22 : vector<8x16xf32>
    %24 = arith.truncf %23 : vector<8x16xf32> to vector<8x16xbf16>
    %25 = arith.mulf %12, %7 : vector<8x16xf32>
    %26 = arith.mulf %11, %8 : vector<8x16xf32>
    %27 = arith.addf %25, %26 : vector<8x16xf32>
    %28 = arith.truncf %27 : vector<8x16xf32> to vector<8x16xbf16>
    %29 = arith.truncf %6 : vector<8x32xf32> to vector<8x32xbf16>
    %c0_8 = arith.constant 0 : index
    %c0_9 = arith.constant 0 : index
    %30 = vector.load %arg3[%c0_8, %c0_9] : memref<32x32xbf16, #tpu.memory_space<vmem>>, vector<32x32xbf16>
    %cst_10 = arith.constant 0.000000e+00 : f32
    %31 = vector.broadcast %cst_10 : f32 to vector<8x32xf32>
    %32 = vector.extract_strided_slice %16 {offsets = [0, 0], sizes = [8, 4], strides = [1, 1]} : vector<8x16xbf16> to vector<8x4xbf16>
    %33 = vector.extract_strided_slice %24 {offsets = [0, 0], sizes = [8, 4], strides = [1, 1]} : vector<8x16xbf16> to vector<8x4xbf16>
    %cst_11 = arith.constant dense<0.000000e+00> : vector<8x8xf32>
    %34 = tpu.matmul %32, %33, %cst_11 {dimension_numbers = #tpu.dot_dimension_numbers<[1], [1], [0], [0], [0, 0, 1, 0], [], []>} : vector<8x4xbf16>, vector<8x4xbf16>, vector<8x8xf32> -> vector<8x8xf32>
    %35 = vector.extract_strided_slice %20 {offsets = [0, 0], sizes = [8, 4], strides = [1, 1]} : vector<8x16xbf16> to vector<8x4xbf16>
    %36 = vector.extract_strided_slice %28 {offsets = [0, 0], sizes = [8, 4], strides = [1, 1]} : vector<8x16xbf16> to vector<8x4xbf16>
    %cst_12 = arith.constant dense<0.000000e+00> : vector<8x8xf32>
    %37 = tpu.matmul %35, %36, %cst_12 {dimension_numbers = #tpu.dot_dimension_numbers<[1], [1], [0], [0], [0, 0, 1, 0], [], []>} : vector<8x4xbf16>, vector<8x4xbf16>, vector<8x8xf32> -> vector<8x8xf32>
    %38 = arith.addf %34, %37 : vector<8x8xf32>
    %cst_13 = arith.constant dense<0xFF800000> : vector<8xf32>
    %39 = vector.multi_reduction <maximumf>, %38, %cst_13 [1] : vector<8x8xf32> to vector<8xf32>
    %40 = vector.shape_cast %39 : vector<8xf32> to vector<8x1xf32>
    %41 = vector.broadcast %40 : vector<8x1xf32> to vector<8x8xf32>
    %42 = arith.subf %38, %41 : vector<8x8xf32>
    %43 = math.exp %42 : vector<8x8xf32>
    %cst_14 = arith.constant dense<0.000000e+00> : vector<8xf32>
    %44 = vector.multi_reduction <add>, %43, %cst_14 [1] : vector<8x8xf32> to vector<8xf32>
    %45 = vector.shape_cast %44 : vector<8xf32> to vector<8x1xf32>
    %46 = tpu.reciprocal %45 {approx = true} : vector<8x1xf32> -> vector<8x1xf32>
    %47 = arith.truncf %43 : vector<8x8xf32> to vector<8x8xbf16>
    %48 = vector.extract_strided_slice %29 {offsets = [0, 0], sizes = [8, 8], strides = [1, 1]} : vector<8x32xbf16> to vector<8x8xbf16>
    %cst_15 = arith.constant dense<0.000000e+00> : vector<8x8xf32>
    %49 = tpu.matmul %47, %48, %cst_15 {dimension_numbers = #tpu.dot_dimension_numbers<[1], [0], [0], [1], [0, 0, 1, 1], [], []>} : vector<8x8xbf16>, vector<8x8xbf16>, vector<8x8xf32> -> vector<8x8xf32>
    %50 = vector.broadcast %46 : vector<8x1xf32> to vector<8x8xf32>
    %51 = arith.mulf %49, %50 : vector<8x8xf32>
    %52 = arith.truncf %51 : vector<8x8xf32> to vector<8x8xbf16>
    %53 = vector.extract_strided_slice %30 {offsets = [0, 0], sizes = [8, 32], strides = [1, 1]} : vector<32x32xbf16> to vector<8x32xbf16>
    %cst_16 = arith.constant dense<0.000000e+00> : vector<8x32xf32>
    %54 = tpu.matmul %52, %53, %cst_16 {dimension_numbers = #tpu.dot_dimension_numbers<[1], [0], [0], [1], [0, 0, 1, 1], [], []>} : vector<8x8xbf16>, vector<8x32xbf16>, vector<8x32xf32> -> vector<8x32xf32>
    %55 = arith.addf %31, %54 : vector<8x32xf32>
    %56 = vector.extract_strided_slice %16 {offsets = [0, 4], sizes = [8, 4], strides = [1, 1]} : vector<8x16xbf16> to vector<8x4xbf16>
    %57 = vector.extract_strided_slice %24 {offsets = [0, 4], sizes = [8, 4], strides = [1, 1]} : vector<8x16xbf16> to vector<8x4xbf16>
    %cst_17 = arith.constant dense<0.000000e+00> : vector<8x8xf32>
    %58 = tpu.matmul %56, %57, %cst_17 {dimension_numbers = #tpu.dot_dimension_numbers<[1], [1], [0], [0], [0, 0, 1, 0], [], []>} : vector<8x4xbf16>, vector<8x4xbf16>, vector<8x8xf32> -> vector<8x8xf32>
    %59 = vector.extract_strided_slice %20 {offsets = [0, 4], sizes = [8, 4], strides = [1, 1]} : vector<8x16xbf16> to vector<8x4xbf16>
    %60 = vector.extract_strided_slice %28 {offsets = [0, 4], sizes = [8, 4], strides = [1, 1]} : vector<8x16xbf16> to vector<8x4xbf16>
    %cst_18 = arith.constant dense<0.000000e+00> : vector<8x8xf32>
    %61 = tpu.matmul %59, %60, %cst_18 {dimension_numbers = #tpu.dot_dimension_numbers<[1], [1], [0], [0], [0, 0, 1, 0], [], []>} : vector<8x4xbf16>, vector<8x4xbf16>, vector<8x8xf32> -> vector<8x8xf32>
    %62 = arith.addf %58, %61 : vector<8x8xf32>
    %cst_19 = arith.constant dense<0xFF800000> : vector<8xf32>
    %63 = vector.multi_reduction <maximumf>, %62, %cst_19 [1] : vector<8x8xf32> to vector<8xf32>
    %64 = vector.shape_cast %63 : vector<8xf32> to vector<8x1xf32>
    %65 = vector.broadcast %64 : vector<8x1xf32> to vector<8x8xf32>
    %66 = arith.subf %62, %65 : vector<8x8xf32>
    %67 = math.exp %66 : vector<8x8xf32>
    %cst_20 = arith.constant dense<0.000000e+00> : vector<8xf32>
    %68 = vector.multi_reduction <add>, %67, %cst_20 [1] : vector<8x8xf32> to vector<8xf32>
    %69 = vector.shape_cast %68 : vector<8xf32> to vector<8x1xf32>
    %70 = tpu.reciprocal %69 {approx = true} : vector<8x1xf32> -> vector<8x1xf32>
    %71 = arith.truncf %67 : vector<8x8xf32> to vector<8x8xbf16>
    %72 = vector.extract_strided_slice %29 {offsets = [0, 8], sizes = [8, 8], strides = [1, 1]} : vector<8x32xbf16> to vector<8x8xbf16>
    %cst_21 = arith.constant dense<0.000000e+00> : vector<8x8xf32>
    %73 = tpu.matmul %71, %72, %cst_21 {dimension_numbers = #tpu.dot_dimension_numbers<[1], [0], [0], [1], [0, 0, 1, 1], [], []>} : vector<8x8xbf16>, vector<8x8xbf16>, vector<8x8xf32> -> vector<8x8xf32>
    %74 = vector.broadcast %70 : vector<8x1xf32> to vector<8x8xf32>
    %75 = arith.mulf %73, %74 : vector<8x8xf32>
    %76 = arith.truncf %75 : vector<8x8xf32> to vector<8x8xbf16>
    %77 = vector.extract_strided_slice %30 {offsets = [8, 0], sizes = [8, 32], strides = [1, 1]} : vector<32x32xbf16> to vector<8x32xbf16>
    %cst_22 = arith.constant dense<0.000000e+00> : vector<8x32xf32>
    %78 = tpu.matmul %76, %77, %cst_22 {dimension_numbers = #tpu.dot_dimension_numbers<[1], [0], [0], [1], [0, 0, 1, 1], [], []>} : vector<8x8xbf16>, vector<8x32xbf16>, vector<8x32xf32> -> vector<8x32xf32>
    %79 = arith.addf %55, %78 : vector<8x32xf32>
    %80 = vector.extract_strided_slice %16 {offsets = [0, 8], sizes = [8, 4], strides = [1, 1]} : vector<8x16xbf16> to vector<8x4xbf16>
    %81 = vector.extract_strided_slice %24 {offsets = [0, 8], sizes = [8, 4], strides = [1, 1]} : vector<8x16xbf16> to vector<8x4xbf16>
    %cst_23 = arith.constant dense<0.000000e+00> : vector<8x8xf32>
    %82 = tpu.matmul %80, %81, %cst_23 {dimension_numbers = #tpu.dot_dimension_numbers<[1], [1], [0], [0], [0, 0, 1, 0], [], []>} : vector<8x4xbf16>, vector<8x4xbf16>, vector<8x8xf32> -> vector<8x8xf32>
    %83 = vector.extract_strided_slice %20 {offsets = [0, 8], sizes = [8, 4], strides = [1, 1]} : vector<8x16xbf16> to vector<8x4xbf16>
    %84 = vector.extract_strided_slice %28 {offsets = [0, 8], sizes = [8, 4], strides = [1, 1]} : vector<8x16xbf16> to vector<8x4xbf16>
    %cst_24 = arith.constant dense<0.000000e+00> : vector<8x8xf32>
    %85 = tpu.matmul %83, %84, %cst_24 {dimension_numbers = #tpu.dot_dimension_numbers<[1], [1], [0], [0], [0, 0, 1, 0], [], []>} : vector<8x4xbf16>, vector<8x4xbf16>, vector<8x8xf32> -> vector<8x8xf32>
    %86 = arith.addf %82, %85 : vector<8x8xf32>
    %cst_25 = arith.constant dense<0xFF800000> : vector<8xf32>
    %87 = vector.multi_reduction <maximumf>, %86, %cst_25 [1] : vector<8x8xf32> to vector<8xf32>
    %88 = vector.shape_cast %87 : vector<8xf32> to vector<8x1xf32>
    %89 = vector.broadcast %88 : vector<8x1xf32> to vector<8x8xf32>
    %90 = arith.subf %86, %89 : vector<8x8xf32>
    %91 = math.exp %90 : vector<8x8xf32>
    %cst_26 = arith.constant dense<0.000000e+00> : vector<8xf32>
    %92 = vector.multi_reduction <add>, %91, %cst_26 [1] : vector<8x8xf32> to vector<8xf32>
    %93 = vector.shape_cast %92 : vector<8xf32> to vector<8x1xf32>
    %94 = tpu.reciprocal %93 {approx = true} : vector<8x1xf32> -> vector<8x1xf32>
    %95 = arith.truncf %91 : vector<8x8xf32> to vector<8x8xbf16>
    %96 = vector.extract_strided_slice %29 {offsets = [0, 16], sizes = [8, 8], strides = [1, 1]} : vector<8x32xbf16> to vector<8x8xbf16>
    %cst_27 = arith.constant dense<0.000000e+00> : vector<8x8xf32>
    %97 = tpu.matmul %95, %96, %cst_27 {dimension_numbers = #tpu.dot_dimension_numbers<[1], [0], [0], [1], [0, 0, 1, 1], [], []>} : vector<8x8xbf16>, vector<8x8xbf16>, vector<8x8xf32> -> vector<8x8xf32>
    %98 = vector.broadcast %94 : vector<8x1xf32> to vector<8x8xf32>
    %99 = arith.mulf %97, %98 : vector<8x8xf32>
    %100 = arith.truncf %99 : vector<8x8xf32> to vector<8x8xbf16>
    %101 = vector.extract_strided_slice %30 {offsets = [16, 0], sizes = [8, 32], strides = [1, 1]} : vector<32x32xbf16> to vector<8x32xbf16>
    %cst_28 = arith.constant dense<0.000000e+00> : vector<8x32xf32>
    %102 = tpu.matmul %100, %101, %cst_28 {dimension_numbers = #tpu.dot_dimension_numbers<[1], [0], [0], [1], [0, 0, 1, 1], [], []>} : vector<8x8xbf16>, vector<8x32xbf16>, vector<8x32xf32> -> vector<8x32xf32>
    %103 = arith.addf %79, %102 : vector<8x32xf32>
    %104 = vector.extract_strided_slice %16 {offsets = [0, 12], sizes = [8, 4], strides = [1, 1]} : vector<8x16xbf16> to vector<8x4xbf16>
    %105 = vector.extract_strided_slice %24 {offsets = [0, 12], sizes = [8, 4], strides = [1, 1]} : vector<8x16xbf16> to vector<8x4xbf16>
    %cst_29 = arith.constant dense<0.000000e+00> : vector<8x8xf32>
    %106 = tpu.matmul %104, %105, %cst_29 {dimension_numbers = #tpu.dot_dimension_numbers<[1], [1], [0], [0], [0, 0, 1, 0], [], []>} : vector<8x4xbf16>, vector<8x4xbf16>, vector<8x8xf32> -> vector<8x8xf32>
    %107 = vector.extract_strided_slice %20 {offsets = [0, 12], sizes = [8, 4], strides = [1, 1]} : vector<8x16xbf16> to vector<8x4xbf16>
    %108 = vector.extract_strided_slice %28 {offsets = [0, 12], sizes = [8, 4], strides = [1, 1]} : vector<8x16xbf16> to vector<8x4xbf16>
    %cst_30 = arith.constant dense<0.000000e+00> : vector<8x8xf32>
    %109 = tpu.matmul %107, %108, %cst_30 {dimension_numbers = #tpu.dot_dimension_numbers<[1], [1], [0], [0], [0, 0, 1, 0], [], []>} : vector<8x4xbf16>, vector<8x4xbf16>, vector<8x8xf32> -> vector<8x8xf32>
    %110 = arith.addf %106, %109 : vector<8x8xf32>
    %cst_31 = arith.constant dense<0xFF800000> : vector<8xf32>
    %111 = vector.multi_reduction <maximumf>, %110, %cst_31 [1] : vector<8x8xf32> to vector<8xf32>
    %112 = vector.shape_cast %111 : vector<8xf32> to vector<8x1xf32>
    %113 = vector.broadcast %112 : vector<8x1xf32> to vector<8x8xf32>
    %114 = arith.subf %110, %113 : vector<8x8xf32>
    %115 = math.exp %114 : vector<8x8xf32>
    %cst_32 = arith.constant dense<0.000000e+00> : vector<8xf32>
    %116 = vector.multi_reduction <add>, %115, %cst_32 [1] : vector<8x8xf32> to vector<8xf32>
    %117 = vector.shape_cast %116 : vector<8xf32> to vector<8x1xf32>
    %118 = tpu.reciprocal %117 {approx = true} : vector<8x1xf32> -> vector<8x1xf32>
    %119 = arith.truncf %115 : vector<8x8xf32> to vector<8x8xbf16>
    %120 = vector.extract_strided_slice %29 {offsets = [0, 24], sizes = [8, 8], strides = [1, 1]} : vector<8x32xbf16> to vector<8x8xbf16>
    %cst_33 = arith.constant dense<0.000000e+00> : vector<8x8xf32>
    %121 = tpu.matmul %119, %120, %cst_33 {dimension_numbers = #tpu.dot_dimension_numbers<[1], [0], [0], [1], [0, 0, 1, 1], [], []>} : vector<8x8xbf16>, vector<8x8xbf16>, vector<8x8xf32> -> vector<8x8xf32>
    %122 = vector.broadcast %118 : vector<8x1xf32> to vector<8x8xf32>
    %123 = arith.mulf %121, %122 : vector<8x8xf32>
    %124 = arith.truncf %123 : vector<8x8xf32> to vector<8x8xbf16>
    %125 = vector.extract_strided_slice %30 {offsets = [24, 0], sizes = [8, 32], strides = [1, 1]} : vector<32x32xbf16> to vector<8x32xbf16>
    %cst_34 = arith.constant dense<0.000000e+00> : vector<8x32xf32>
    %126 = tpu.matmul %124, %125, %cst_34 {dimension_numbers = #tpu.dot_dimension_numbers<[1], [0], [0], [1], [0, 0, 1, 1], [], []>} : vector<8x8xbf16>, vector<8x32xbf16>, vector<8x32xf32> -> vector<8x32xf32>
    %127 = arith.addf %103, %126 : vector<8x32xf32>
    %c0_35 = arith.constant 0 : index
    %c0_36 = arith.constant 0 : index
    %c0_37 = arith.constant 0 : index
    %128 = vector.load %arg6[%c0_35, %c0_36, %c0_37] : memref<1x8x32xf32, #tpu.memory_space<vmem>>, vector<1x8x32xf32>
    %129 = vector.shape_cast %128 : vector<1x8x32xf32> to vector<8x32xf32>
    %130 = vector.shape_cast %127 : vector<8x32xf32> to vector<1x8x32xf32>
    tpu.vector_store %arg6[%c0_35, %c0_36, %c0_37], %130 {strides = array<i32>} : memref<1x8x32xf32, #tpu.memory_space<vmem>>, vector<1x8x32xf32>,
    return
  }
  func.func @transform_0(%arg0: i32) -> (i32, i32, i32) {
    %c0_i32 = arith.constant 0 : i32
    %c0_i32_0 = arith.constant 0 : i32
    %c0_i32_1 = arith.constant 0 : i32
    return %arg0, %c0_i32, %c0_i32_0 : i32, i32, i32
  }
  func.func @transform_1(%arg0: i32) -> (i32, i32) {
    %c0_i32 = arith.constant 0 : i32
    %c0_i32_0 = arith.constant 0 : i32
    %c0_i32_1 = arith.constant 0 : i32
    return %c0_i32, %c0_i32_0 : i32, i32
  }
  func.func @transform_2(%arg0: i32) -> (i32, i32) {
    %c0_i32 = arith.constant 0 : i32
    %c0_i32_0 = arith.constant 0 : i32
    %c0_i32_1 = arith.constant 0 : i32
    return %c0_i32, %c0_i32_0 : i32, i32
  }
  func.func @transform_3(%arg0: i32) -> (i32, i32) {
    %c0_i32 = arith.constant 0 : i32
    %c0_i32_0 = arith.constant 0 : i32
    %c0_i32_1 = arith.constant 0 : i32
    return %c0_i32, %c0_i32_0 : i32, i32
  }
  func.func @transform_4(%arg0: i32) -> (i32, i32) {
    %c0_i32 = arith.constant 0 : i32
    %c0_i32_0 = arith.constant 0 : i32
    %c0_i32_1 = arith.constant 0 : i32
    return %c0_i32, %c0_i32_0 : i32, i32
  }
  func.func @transform_5(%arg0: i32) -> (i32, i32, i32) {
    %c0_i32 = arith.constant 0 : i32
    %c0_i32_0 = arith.constant 0 : i32
    %c0_i32_1 = arith.constant 0 : i32
    return %arg0, %c0_i32, %c0_i32_0 : i32, i32, i32
  }
}

</mosaic_0001>

<bundles_post_ra>
// kernel: tpu_custom_call.1
= control target key start
LH: loop header
LB: loop body
LE: loop exit
PB: predicated region body
PF: predicated region fallthrough
CT: control target
= control target key end

     0   :  { %10 = vsyncpa [#allocation3], 0  ;;  %s2303_s0 = inlined_call_operand.hbm [shape: bf16[2,8,32], index: 0, kind: input, shape index: {}]   ;;  %s2304_s1 = inlined_call_operand.hbm [shape: bf16[32,96], index: 1, kind: input, shape index: {}]   ;;  %s2305_s2 = inlined_call_operand.hbm [shape: bf16[32,32], index: 2, kind: input, shape index: {}]   ;;  %s2306_s3 = inlined_call_operand.vmem [shape: f32[8,16], index: 3, kind: input, shape index: {}]   ;;  %s2307_s4 = inlined_call_operand.hbm [shape: f32[8,16], index: 4, kind: input, shape index: {}]   ;;  %s2308_s5 = inlined_call_operand.hbm [shape: f32[2,8,32], index: 5, kind: output, shape index: {}]  }
   0x1   :  { %12 = vsyncpa [#allocation3 + $0x1], 0 }
   0x2   :  { %13 = vsyncpa [#allocation6], 0 }
   0x3   :  { %14 = vsyncpa [#allocation9], 0 }
   0x4   :  { %15 = vsyncpa [#allocation4], 0 }
   0x5   :  { %17 = vsyncpa [#allocation4 + $0x1], 0  ;;  %s1927_s18 = smov 0   ;;  %s1929_s19 = smov 0  }
   0x6   :  { %s1931_s20 = smov 0   ;;  %s1933_s21 = smov 0  }
   0x7 LB: > { %s1948_s22 = sadd.s32 4294967295, %s1865_s21   ;;  %s1353_s23 = sadd.s32 4294967294, %s1865_s21   ;;  %s1865_s21 = sphi %s1933_s21, %s2331_s21   ;;  %s1861_s20 = sphi %s1931_s20, %s2330_s20   ;;  %s1857_s19 = sphi %s1929_s19, %s2329_s19   ;;  %s1853_s18 = sphi %s1927_s18, %s2328_s18  }
   0x8   : > { %p43_p0 = scmp.ne.s32.totalorder %s1857_s19, %s1853_s18  ;;  %p2309_p1 = scmp.eq.s32.totalorder %s1948_s22, 0 }
   0x9   : > { %p157_p3 = scmp.eq.s32.totalorder %s1353_s23, 1  ;;  %p1354_p5 = scmp.ge.s32.totalorder %s1865_s21, 1 }
   0xa   : > { %p1957_p4 = por %p2309_p1, %p43_p0  ;;  %p164_p7 = scmp.lt.s32.totalorder %s1865_s21, 3 }
   0xb   : > { %p1962_p6 = por %p157_p3, %p43_p0  ;;  %s1867_s27 = smov [#allocation5]  }
   0xc   : > { %s2312_s24 = scalar_select %p1957_p4, 1, 0 }
   0xd   : > { %s2313_s25 = scalar_select %p1962_p6, 1, 0 }
   0xe   : > { %p1967_p8 = pnand %p1354_p5, %p164_p7  ;;  %s176_s28 = sshll.u32 %s1867_s27, 4  ;;  %s1971_s28 = int_to_ptr.vmem [resolvable:$true] %s176_s28 }
   0xf   : > { %s1868_s30 = smov [#allocation7]   ;;  %s1869_s7 = smov [#allocation8]  }
  0x10   : > { %s2314_s26 = scalar_select %p1967_p8, 1, 0 }
  0x11   : > { %p1573_p9 = pneg %p1967_p8  ;;  %s189_s6 = sshll.u32 %s1868_s30, 4  ;;  %s1982_s6 = int_to_ptr.vmem [resolvable:$true] %s189_s6 }
  0x12   : > { %s1984_s8 = sshll.u32 %s1869_s7, 4  ;;  %s1677_s11 = scalar_lea.hbm %s2304_s1, 256  ;;  %s207_s8 = int_to_ptr.vmem [resolvable:$true] %s1984_s8 }
  0x13   : > { %p1978_p11 = pnand %p1573_p9, %p2309_p1  ;;  %p1678_p12 = scmp.ne.s32.totalorder %s2304_s1, %s1677_s11 }
  0x14   : > { %p1684_p5 = scmp.lt.u32.totalorder %s1677_s11, %s2304_s1 }
  0x15   : > { %p1994_p13 = pneg %p1978_p11 }
  0x17   : > { %p1680_p0 = pnand %p1994_p13, %p1678_p12 }
  0x19   : > { %p1681_p3 = pneg %p1680_p0 }
  0x1b   : > { %p1686_p7 = pnand %p1684_p5, %p1681_p3 }
  0x1d   : > { %1689 = shalt.err (!%p1686_p7)
}
  0x1e   : > { %s1690_s17 = scalar_lea.vmem %s1971_s28, 256  ;;  %p1698_p2 = scmp.lt.s32.totalorder %s1971_s28, %s1971_s28 }
  0x1f   : > { %p1691_p9 = scmp.ne.s32.totalorder %s1971_s28, %s1690_s17  ;;  %p1699_p6 = scmp.lt.s32.totalorder %s1690_s17, %s1690_s17 }
  0x21   : > { %p1693_p10 = pnand %p1691_p9, %p1994_p13  ;;  %p1700_p12 = por %p1699_p6, %p1698_p2 }
  0x23   : > { %p1694_p1 = pneg %p1693_p10 }
  0x25   : > { %p1701_p0 = pnand %p1700_p12, %p1694_p1 }
  0x27   : > { %1704 = shalt.err (!%p1701_p0)
}
  0x28   : > { %s1870_s23 = smov 64   ;;  %s1871_s27 = smov 4  }
  0x29   : > { %1576 = dma.hbm_to_vmem [thread:$0]  (!%p1978_p11), %s2304_s1, 256, %s1971_s28, [#allocation6], %s1870_s23, %s1870_s23, %s1871_s27  }
  0x2a   : > { %s1705_s11 = scalar_lea.hbm %s2305_s2, 256 }
  0x2b   : > { %p1706_p2 = scmp.ne.s32.totalorder %s2305_s2, %s1705_s11  ;;  %p1712_p10 = scmp.lt.u32.totalorder %s1705_s11, %s2305_s2 }
  0x2d   : > { %p1708_p1 = pnand %p1706_p2, %p1994_p13 }
  0x2f   : > { %p1709_p6 = pneg %p1708_p1 }
  0x31   : > { %p1714_p3 = pnand %p1712_p10, %p1709_p6 }
  0x33   : > { %1717 = shalt.err (!%p1714_p3)
}
  0x34   : > { %s1718_s28 = scalar_lea.vmem %s1982_s6, 256  ;;  %p1726_p12 = scmp.lt.s32.totalorder %s1982_s6, %s1982_s6 }
  0x35   : > { %p1719_p5 = scmp.ne.s32.totalorder %s1982_s6, %s1718_s28  ;;  %p1727_p0 = scmp.lt.s32.totalorder %s1718_s28, %s1718_s28 }
  0x37   : > { %p1721_p7 = pnand %p1719_p5, %p1994_p13  ;;  %p1728_p2 = por %p1727_p0, %p1726_p12 }
  0x39   : > { %p1722_p9 = pneg %p1721_p7 }
  0x3b   : > { %p1729_p1 = pnand %p1728_p2, %p1722_p9 }
  0x3d   : > { %1732 = shalt.err (!%p1729_p1)
}
  0x3e   : > { %1579 = dma.hbm_to_vmem [thread:$0]  (!%p1978_p11), %s2305_s2, 256, %s1982_s6, [#allocation6], %s1870_s23, %s1870_s23, %s1871_s27  }
  0x3f   : > { %s1733_s10 = scalar_lea.hbm %s2307_s4, 128 }
  0x40   : > { %p1734_p6 = scmp.ne.s32.totalorder %s2307_s4, %s1733_s10  ;;  %p1740_p5 = scmp.lt.u32.totalorder %s1733_s10, %s2307_s4 }
  0x42   : > { %p1736_p10 = pnand %p1734_p6, %p1994_p13 }
  0x44   : > { %p1737_p3 = pneg %p1736_p10 }
  0x46   : > { %p1742_p7 = pnand %p1740_p5, %p1737_p3 }
  0x48   : > { %1745 = shalt.err (!%p1742_p7)
}
  0x49   : > { %s1746_s16 = scalar_lea.vmem %s207_s8, 128  ;;  %p1754_p2 = scmp.lt.s32.totalorder %s207_s8, %s207_s8 }
  0x4a   : > { %p1747_p9 = scmp.ne.s32.totalorder %s207_s8, %s1746_s16  ;;  %p1755_p1 = scmp.lt.s32.totalorder %s1746_s16, %s1746_s16 }
  0x4c   : > { %p1749_p12 = pnand %p1747_p9, %p1994_p13  ;;  %p1756_p4 = por %p1755_p1, %p1754_p2 }
  0x4e   : > { %p1750_p0 = pneg %p1749_p12 }
  0x50   : > { %p1757_p8 = pnand %p1756_p4, %p1750_p0 }
  0x52   : > { %1760 = shalt.err (!%p1757_p8)
}
  0x53   : > { %1582 = dma.hbm_to_vmem [thread:$0]  (!%p1978_p11), %s2307_s4, 128, %s207_s8, [#allocation9]  }
  0x54   : > { %s2058_s14 = sadd.s32 1, %s1865_s21   ;;  %s30_s29 = sadd.s32 1, %s1861_s20 }
  0x55   : > { %s27_s27 = ssub.s32 %s1865_s21, %s2058_s14  ;;  %p37_p8 = scmp.ne.s32.totalorder %s1861_s20, %s1857_s19 }
  0x56   : > { %p28_p4 = scmp.eq.s32.totalorder %s27_s27, 0  ;;  %p38_p13 = scmp.eq.s32.totalorder %s1865_s21, 0 }
  0x57   : > { %p1594_p6 = scmp.lt.s32.totalorder %s1865_s21, 2  ;;  %p2317_p3 = scmp.eq.s32.totalorder %s1948_s22, 1 }
  0x58   : > { %s2068_s28 = scalar_select %p28_p4, %s1861_s20, %s30_s29  }
  0x59   : > { %p39_p10 = por %p38_p13, %p37_p8  ;;  %p2072_p5 = por %p2317_p3, %p37_p8 }
  0x5a   : > { %s217_s30 = sand.u32 1, %s1861_s20   ;;  %s1360_s7 = sshll.u32 %s1865_s21, 6 }
  0x5b   : > { %s1359_s8 = sshll.u32 %s217_s30, 2  ;;  %s2081_s11 = scalar_lea.hbm %s2303_s0, %s1360_s7 }
  0x5c   : > { %s221_s12 = scalar_lea.vmem [#allocation2], %s1359_s8  ;;  %p2083_p11 = pnand %p1594_p6, %p39_p10 }
  0x5d   : > { %s228_s13 = sshll.u32 %s221_s12, 4  ;;  %s218_s16 = scalar_lea.sflag [#allocation3], %s217_s30  ;;  %s2087_s13 = int_to_ptr.vmem [resolvable:$true] %s228_s13 }
  0x5e   : > { %s1761_s6 = scalar_lea.hbm %s2081_s11, 64  ;;  %p1763_p9 = pneg %p2083_p11 }
  0x5f   : > { %p1762_p7 = scmp.ne.s32.totalorder %s2081_s11, %s1761_s6  ;;  %s1766_s29 = scalar_lea.hbm %s2303_s0, 128 }
  0x60   : > { %p1767_p2 = scmp.lt.u32.totalorder %s2081_s11, %s2303_s0  ;;  %p1768_p1 = scmp.lt.u32.totalorder %s1766_s29, %s1761_s6 }
  0x61   : > { %p1764_p12 = pnand %p1763_p9, %p1762_p7  ;;  %p1770_p8 = scmp.lt.u32.totalorder %s1761_s6, %s2081_s11 }
  0x62   : > { %p1769_p4 = por %p1768_p1, %p1767_p2 }
  0x63   : > { %p1765_p0 = pneg %p1764_p12 }
  0x64   : > { %p1771_p13 = por %p1770_p8, %p1769_p4 }
  0x66   : > { %p1772_p6 = pnand %p1771_p13, %p1765_p0 }
  0x68   : > { %1775 = shalt.err (!%p1772_p6)
}
  0x69   : > { %s1776_s30 = scalar_lea.vmem %s2087_s13, 64  ;;  %s1872_s9 = smov [#allocation2]  }
  0x6a   : > { %p1777_p10 = scmp.ne.s32.totalorder %s2087_s13, %s1776_s30  ;;  %s1781_s10 = sshll.u32 %s1872_s9, 4  ;;  %s1782_s10 = int_to_ptr.vmem [resolvable:$false] %s1781_s10 }
  0x6b   : > { %s1783_s12 = scalar_lea.vmem %s1782_s10, 128  ;;  %p1784_p12 = scmp.lt.s32.totalorder %s2087_s13, %s1782_s10 }
  0x6c   : > { %p1779_p3 = pnand %p1777_p10, %p1763_p9  ;;  %p1785_p2 = scmp.lt.s32.totalorder %s1783_s12, %s1776_s30 }
  0x6e   : > { %p1780_p7 = pneg %p1779_p3  ;;  %p1786_p1 = por %p1785_p2, %p1784_p12 }
  0x70   : > { %p1787_p4 = pnand %p1786_p1, %p1780_p7 }
  0x72   : > { %1790 = shalt.err (!%p1787_p4)
}
  0x73   : > { %1586 = dma.hbm_to_vmem [thread:$0]  (!%p2083_p11), %s2081_s11, 64, %s2087_s13, %s218_s16  }
  0x74   : > { %p2320_p0 = scmp.ne.s32.totalorder %s2314_s26, 0 }
  0x75   : > { %s2117_s6 = sand.u32 (!%p2320_p0), 1, %s1857_s19   ;;  %p2321_p9 = scmp.ne.s32.totalorder (!%p2320_p0), %s2312_s24, 0 }
  0x76   : > { %237 = sbr.rel (%p2320_p0) target bundleno = 2277 (0x8e5), region = 40  ;;  %s1362_s23 = sshll.u32 (!%p2320_p0), %s2117_s6, 2 }
  0x77   : > { %s240_s27 = scalar_lea.sflag (!%p2320_p0), [#allocation3], %s2117_s6  ;;  %s243_s29 = scalar_lea.vmem (!%p2320_p0), [#allocation2], %s1362_s23 }
  0x7d   : > { %1836 = dma.done.wait (%p2321_p9), %s240_s27, 64  }
  0x7e   : > { %1838 = vsyncadd (%p2321_p9), %s240_s27, 4294967232  ;;  %p2322_p8 = scmp.eq.s32.totalorder %s1948_s22, 0 }
  0x80   : > { %1840 = dma.done.wait (%p2322_p8), [#allocation6], 512   ;;  %p2323_p11 = pmov %p2322_p8 }
  0x81   : > { %p2324_p13 = pmov %p2322_p8 }
  0x82   : > { %1842 = vsyncadd (%p2323_p11), [#allocation6], 4294966784 }
  0x83   : > { %1844 = dma.done.wait (%p2324_p13), [#allocation9], 128   ;;  %p2325_p6 = pmov %p2322_p8 }
  0x84   : > { %v1873_v0 = vmov 0.0   ;;  %vm1874_vm0 = vmmov 0   ;;  %v1659_v1 = vld [vmem:[#allocation5] sm:$0xff]   ;;  %v1660_v2 = vld [vmem:[#allocation5 + $0x8] sm:$0xff]   ;;  %s1875_s24 = smov 32   ;;  %v2143_v4 = vld [vmem:[%s2306_s3] sm:$0xff] }
  0x85   : > { %1846 = vsyncadd (%p2325_p6), [#allocation9], 4294967168  ;;  %1425 = vmatprep.subr.bf16.mxu0 %v1873_v0  ;;  %1429 = vmatprep.mubr.msk.bf16.mxu0 %vm1874_vm0, %v1873_v0  ;;  %v345_v3 = vld [vmem:[#allocation8] sm:$0xff]  ;;  %s1876_s13 = smov 48   ;;  %v283_v5 = vld [vmem:[%s243_s29] sm:$0xf] }
  0x86   : > { %1433 = vmatprep.subr.bf16.mxu1 %v1873_v0  ;;  %1435 = vmatprep.mubr.msk.bf16.mxu1 %vm1874_vm0, %v1873_v0  ;;  %vm300_vm1 = vcmask 261120   ;;  %s1877_s15 = smov 16   ;;  %s1878_s16 = smov 112   ;;  %vm409_vm2 = vcmask 31744   ;;  %vm523_vm3 = vcmask 1043456   ;;  %vm505_vm4 = vcmask 64512  }
  0x87   : > { %1426 = vmatpush3.bf16.msra.mxu0 %v1659_v1  ;;  %388 = vrot.lane.b32.xlu0 %v345_v3, %s1875_s24  ;;  %s1879_s7 = smov 80   ;;  %s1880_s8 = smov 96  }
  0x88   : > { %1427 = vmatprep.subr.bf16.mxu0 %v1873_v0  ;;  %384 = vrot.lane.b32.xlu1 %v2143_v4, %s1876_s13  ;;  %s1881_s30 = smov 64   ;;  %s1882_s9 = smov 76  }
  0x89   : > { %s1883_s10 = smov 108   ;;  %s1884_s12 = smov 92  }
  0x8a   : > { %s1885_s23 = smov 124   ;;  %s1886_s27 = smov 72  }
  0x8b   : > { %1428 = vmatpush3.bf16.msra.mxu0 %v1660_v2  ;;  %374 = vrot.lane.b32.xlu0 %v345_v3, %s1876_s13  ;;  %s1887_s29 = smov 104   ;;  %s1889_s26 = smov 120  }
  0x8c   : > { %1445 = vmatprep.subr.bf16.mxu0 %v1873_v0  ;;  %s1890_s11 = smov 56  }
  0x8e   : > { %1430 = vmatmul.mubr.msk.bf16.vlgmr.msra.gmra.mrb[0].mxu0 %vm300_vm1, %v283_v5 }
  0x8f   : > { %1447 = vmatprep.mubr.msk.bf16.mxu0 %vm1874_vm0, %v1873_v0  ;;  %359 = vrot.lane.b32.xlu0 %v2143_v4, %s1877_s15 }
  0x93   : > { %370 = vrot.lane.b32.xlu0 %v2143_v4, %s1875_s24  ;;  %s1888_s24 = smov 88  }
  0x97   : > { %348 = vrot.lane.b32.xlu0 %v345_v3, %s1877_s15 }
  0xf9   : > { %v389_v6 = vpop.permute.xlu0 %388 }
  0xfa   : > { %v385_v16 = vpop.permute.xlu1 %384 }
  0xfd   : > { %v375_v13 = vpop.permute.xlu0 %374 }
 0x101   : > { %v360_v15 = vpop.permute.xlu0 %359 }
 0x105   : > { %v371_v20 = vpop.permute.xlu0 %370 }
 0x109   : > { %v349_v27 = vpop.permute.xlu0 %348 }
 0x161   : > { %v338_v7 = vpop.f32.mrb[0].mxu0 }
 0x162   : > { %v1431_v8 = vpop.f32.mrb[1].mxu0  ;;  %v391_v9 = vmul.f32 %v389_v6, %v338_v7  ;;  %v363_v12 = vmul.f32 %v345_v3, %v338_v7  ;;  %v377_v14 = vmul.f32 %v375_v13, %v338_v7  ;;  %v387_v17 = vmul.f32 %v385_v16, %v338_v7 }
 0x163   : > { %v341_v10 = vpop.f32.mrb[2].mxu0  ;;  %v362_v22 = vmul.f32 %v360_v15, %v338_v7  ;;  %v373_v26 = vmul.f32 %v371_v20, %v338_v7  ;;  %v351_v31 = vmul.f32 %v349_v27, %v338_v7  ;;  %v2157_v32 = vpack.c.bf16 %v338_v7, %v338_v7 }
 0x164   : > { %393 = vrot.lane.b32.xlu1 %v391_v9, %s1877_s15  ;;  %v1432_v11 = vpop.f32.mrb[3].mxu0  ;;  %v346_v36 = vmul.f32 %v2143_v4, %v338_v7 }
 0x168   : > { %365 = vrot.lane.b32.xlu1 %v363_v12, %s1877_s15  ;;  %s1891_s15 = smov 100  }
 0x16c   : > { %379 = vrot.lane.b32.xlu1 %v377_v14, %s1878_s16 }
 0x1d6   : > { %v394_v18 = vpop.permute.xlu1 %393 }
 0x1d7   : > { %v396_v19 = vadd.f32 %v394_v18, %v387_v17 }
 0x1d9   : > { %v2154_v21 = vpack.c.bf16 %v396_v19, %v396_v19 }
 0x1da   : > { %v366_v23 = vpop.permute.xlu1 %365 }
 0x1db   : > { %v368_v24 = vadd.f32 %v366_v23, %v362_v22  ;;  %407 = vrot.lane.b32.xlu1 %v2154_v21, %s1879_s7  ;;  %s1893_s7 = smov 116  }
 0x1dd   : > { %v369_v25 = vpack.c.bf16 %v368_v24, %v368_v24 }
 0x1de   : > { %v380_v28 = vpop.permute.xlu1 %379 }
 0x1df   : > { %v382_v29 = vsub.f32 %v373_v26, %v380_v28  ;;  %404 = vrot.lane.b32.xlu0 %v369_v25, %s1878_s16 }
 0x1e1   : > { %v383_v30 = vpack.c.bf16 %v382_v29, %v382_v29 }
 0x1e3   : > { %457 = vrot.lane.b32.xlu1 %v383_v30, %s1880_s8  ;;  %353 = vrot.lane.b32.xlu0 %v351_v31, %s1878_s16  ;;  %s1892_s16 = smov 84   ;;  %s1894_s8 = smov 68  }
 0x1e7   : > { %518 = vrot.lane.b32.xlu0 %v2157_v32, %s1881_s30  ;;  %s1366_s30 = sshll.u32 %s2117_s6, 3 }
 0x1eb   : > { %571 = vrot.lane.b32.xlu0 %v2154_v21, %s1882_s9  ;;  %s1387_s9 = sshll.u32 %s1948_s22, 7  ;;  %s1896_s22 = smov [#allocation10]  }
 0x1ef   : > { %569 = vrot.lane.b32.xlu0 %v369_v25, %s1883_s10  ;;  %s281_s10 = scalar_lea.vmem [#allocation10], %s1366_s30 }
 0x1f3   : > { %622 = vrot.lane.b32.xlu0 %v383_v30, %s1884_s12  ;;  %s1254_s12 = sshll.u32 %s281_s10, 4  ;;  %s2260_s12 = int_to_ptr.vmem [resolvable:$true] %s1254_s12 }
 0x24d   : > { %v408_v33 = vpop.permute.xlu1 %407 }
 0x24e   : > { %v414_v34 = vsel %vm409_vm2, %v408_v33, 0  ;;  %v400_v33 = vld [vmem:[#allocation7 + $0x4] sm:$0xf] }
 0x24f   : > { %1434 = vmatpush3.bf16.xpose.msra.mxu1 %v414_v34  ;;  %v735_v34 = vsel %vm523_vm3, %v400_v33, 0 }
 0x250   : > { %1439 = vmatprep.subr.bf16.mxu1 %v1873_v0 }
 0x251   : > { %v405_v35 = vpop.permute.xlu0 %404 }
 0x255   : > { %v458_v37 = vpop.permute.xlu1 %457  ;;  %v354_v38 = vpop.permute.xlu0 %353 }
 0x256   : > { %v463_v39 = vsel %vm409_vm2, %v458_v37, 0  ;;  %v356_v40 = vsub.f32 %v346_v36, %v354_v38  ;;  %1436 = vmatmul.mubr.msk.bf16.vlgmr.msra.gmra.mrb[0].mxu1 %vm409_vm2, %v405_v35 }
 0x257   : > { %1440 = vmatpush3.bf16.xpose.msra.mxu1 %v463_v39  ;;  %1441 = vmatprep.mubr.msk.bf16.mxu1 %vm1874_vm0, %v1873_v0 }
 0x258   : > { %v357_v41 = vpack.c.bf16 %v356_v40, %v356_v40  ;;  %1463 = vmatprep.subr.bf16.mxu1 %v1873_v0 }
 0x259   : > { %v519_v42 = vpop.permute.xlu0 %518 }
 0x25a   : > { %v525_v43 = vsel %vm523_vm3, %v519_v42, 0  ;;  %620 = vrot.lane.b32.xlu0 %v357_v41, %s1885_s23  ;;  %v399_v42 = vld [vmem:[#allocation7] sm:$0xf] }
 0x25b   : > { %1446 = vmatpush3.bf16.msra.mxu0 %v525_v43 }
 0x25c   : > { %1451 = vmatprep.subr.bf16.mxu0 %v1873_v0 }
 0x25d   : > { %v572_v44 = vpop.permute.xlu0 %571 }
 0x25e   : > { %825 = vrot.lane.b32.xlu0 %v2154_v21, %s1886_s27  ;;  %v577_v1 = vsel %vm409_vm2, %v572_v44, 0 }
 0x261   : > { %v570_v45 = vpop.permute.xlu0 %569 }
 0x262   : > { %823 = vrot.lane.b32.xlu0 %v369_v25, %s1887_s29  ;;  %1442 = vmatmul.mubr.msk.bf16.vlgmr.msra.gmra.mrb[0].mxu1 %vm409_vm2, %v357_v41  ;;  %s2258_s29 = scalar_lea.hbm %s2308_s5, %s1387_s9 }
 0x263   : > { %1465 = vmatprep.mubr.msk.bf16.mxu1 %vm1874_vm0, %v1873_v0 }
 0x265   : > { %v623_v46 = vpop.permute.xlu0 %622 }
 0x266   : > { %875 = vrot.lane.b32.xlu0 %v383_v30, %s1888_s24  ;;  %v628_v2 = vsel %vm409_vm2, %v623_v46, 0  ;;  %s1241_s24 = scalar_lea.sflag [#allocation4], %s2117_s6 }
 0x26a   : > { %873 = vrot.lane.b32.xlu0 %v357_v41, %s1889_s26  ;;  %s1791_s26 = scalar_lea.vmem %s2260_s12, 128 }
 0x26b   : > { %p1792_p10 = scmp.ne.s32.totalorder %s2260_s12, %s1791_s26 }
 0x26d   : > { %p1793_p3 = pnand %p1792_p10, %p2072_p5 }
 0x26e   : > { %681 = vrot.lane.b32.xlu0 %v2157_v32, %s1890_s11  ;;  %s1795_s11 = sshll.u32 %s1896_s22, 4  ;;  %s1796_s11 = int_to_ptr.vmem [resolvable:$false] %s1795_s11 }
 0x26f   : > { %p1794_p7 = pneg %p1793_p3  ;;  %p1798_p12 = scmp.lt.s32.totalorder %s2260_s12, %s1796_s11 }
 0x272   : > { %1031 = vrot.lane.b32.xlu0 %v369_v25, %s1891_s15  ;;  %s1797_s15 = scalar_lea.vmem %s1796_s11, 256 }
 0x273   : > { %p1799_p2 = scmp.lt.s32.totalorder %s1797_s15, %s1791_s26 }
 0x275   : > { %p1800_p1 = por %p1799_p2, %p1798_p12 }
 0x276   : > { %1083 = vrot.lane.b32.xlu0 %v383_v30, %s1892_s16 }
 0x277   : > { %p1801_p4 = pnand %p1800_p1, %p1794_p7 }
 0x27a   : > { %1081 = vrot.lane.b32.xlu0 %v357_v41, %s1893_s7 }
 0x2cc   : > { %v621_v47 = vpop.permute.xlu0 %620 }
 0x2d0   : > { %v826_v48 = vpop.permute.xlu0 %825 }
 0x2d1   : > { %v831_v3 = vsel %vm409_vm2, %v826_v48, 0  ;;  %v781_v48 = vsel %vm523_vm3, %v399_v42, 0 }
 0x2d4   : > { %v824_v49 = vpop.permute.xlu0 %823 }
 0x2d8   : > { %v876_v50 = vpop.permute.xlu0 %875 }
 0x2d9   : > { %v881_v4 = vsel %vm409_vm2, %v876_v50, 0 }
 0x2dc   : > { %v874_v51 = vpop.permute.xlu0 %873 }
 0x2e0   : > { %v682_v52 = vpop.permute.xlu0 %681 }
 0x2e1   : > { %v687_v53 = vsel %vm523_vm3, %v682_v52, 0 }
 0x2e2   : > { %1464 = vmatpush3.bf16.msra.mxu1 %v687_v53 }
 0x2e3   : > { %1469 = vmatprep.subr.bf16.mxu1 %v1873_v0 }
 0x2e4   : > { %v1032_v23 = vpop.permute.xlu0 %1031 }
 0x2e8   : > { %v1084_v26 = vpop.permute.xlu0 %1083 }
 0x2ec   : > { %v1082_v31 = vpop.permute.xlu0 %1081 }
 0x335   : > { %v499_v54 = vpop.f32.mrb[0].mxu1 }
 0x336   : > { %v1443_v55 = vpop.f32.mrb[1].mxu1  ;;  %v506_v56 = vsel %vm505_vm4, %v499_v54, -inf }
 0x337   : > { %507 = vmax.xlane.f32.xlu1 %v506_v56  ;;  %v502_v57 = vpop.f32.mrb[2].mxu1 }
 0x338   : > { %v1444_v58 = vpop.f32.mrb[3].mxu1 }
 0x3c4   : > { %v508_v59 = vpop.xlane.xlu1 %507 }
 0x3c5   : > { %v509_v60 = vsub.f32 %v499_v54, %v508_v59 }
 0x3c7   : > { %v510_v61 = vmul.f32 1.442695, %v509_v60 }
 0x3c9   : > { %1661 = vpow2.f32 %v510_v61 }
 0x3d3   : > { %v1662_v62 = vpop.eup %1661 }
 0x3d4   : > { %v516_v63 = vpack.c.bf16 %v1662_v62, %v1662_v62  ;;  %v512_v18 = vsel %vm505_vm4, %v1662_v62, 0.0  ;;  %v401_v62 = vld [vmem:[#allocation7 + $0x8] sm:$0xf] }
 0x3d6   : > { %1448 = vmatmul.mubr.msk.bf16.vlgmr.msra.gmra.mrb[4].mxu0 %vm505_vm4, %v516_v63  ;;  %v988_v63 = vsel %vm523_vm3, %v401_v62, 0 }
 0x3d7   : > { %1452 = vmatpush3.bf16.xpose.msra.mxu0 %v577_v1  ;;  %1453 = vmatprep.mubr.msk.bf16.mxu0 %vm1874_vm0, %v1873_v0 }
 0x3d8   : > { %1457 = vmatprep.subr.bf16.mxu0 %v1873_v0 }
 0x3de   : > { %1454 = vmatmul.mubr.msk.bf16.vlgmr.msra.gmra.mrb[8].mxu0 %vm409_vm2, %v570_v45 }
 0x3df   : > { %1458 = vmatpush3.bf16.xpose.msra.mxu0 %v628_v2  ;;  %1459 = vmatprep.mubr.msk.bf16.mxu0 %vm1874_vm0, %v1873_v0 }
 0x3e0   : > { %1481 = vmatprep.subr.bf16.mxu0 %v1873_v0 }
 0x3ea   : > { %1460 = vmatmul.mubr.msk.bf16.vlgmr.msra.gmra.mrb[8].mxu0 %vm409_vm2, %v621_v47 }
 0x3eb   : > { %1482 = vmatpush3.bf16.xpose.msra.mxu0 %v831_v3  ;;  %1483 = vmatprep.mubr.msk.bf16.mxu0 %vm1874_vm0, %v1873_v0 }
 0x3ec   : > { %1487 = vmatprep.subr.bf16.mxu0 %v1873_v0 }
 0x3f2   : > { %1484 = vmatmul.mubr.msk.bf16.vlgmr.msra.gmra.mrb[12].mxu0 %vm409_vm2, %v824_v49 }
 0x3f3   : > { %1488 = vmatpush3.bf16.xpose.msra.mxu0 %v881_v4  ;;  %1489 = vmatprep.mubr.msk.bf16.mxu0 %vm1874_vm0, %v1873_v0 }
 0x3f4   : > { %1505 = vmatprep.subr.bf16.mxu0 %v1873_v0 }
 0x3fe   : > { %1490 = vmatmul.mubr.msk.bf16.vlgmr.msra.gmra.mrb[12].mxu0 %vm409_vm2, %v874_v51 }
 0x3ff   : > { %1507 = vmatprep.mubr.msk.bf16.mxu0 %vm1874_vm0, %v1873_v0 }
 0x4a9   : > { %v2202_v5 = vpop.f32.mrb[4].mxu0 }
 0x4aa   : > { %v1449_v6 = vpop.f32.mrb[5].mxu0 }
 0x4ab   : > { %v564_v7 = vpop.f32.mrb[6].mxu0 }
 0x4ac   : > { %v1450_v8 = vpop.f32.mrb[7].mxu0 }
 0x4bd   : > { %v664_v9 = vpop.f32.mrb[8].mxu0 }
 0x4be   : > { %v1461_v10 = vpop.f32.mrb[9].mxu0  ;;  %v670_v11 = vsel %vm505_vm4, %v664_v9, -inf }
 0x4bf   : > { %671 = vmax.xlane.f32.xlu1 %v670_v11  ;;  %v667_v12 = vpop.f32.mrb[10].mxu0 }
 0x4c0   : > { %v1462_v13 = vpop.f32.mrb[11].mxu0 }
 0x4d0   : > { %1033 = vrot.lane.b32.xlu1 %v2154_v21, %s1894_s8  ;;  %v1089_v21 = vsel %vm409_vm2, %v1084_v26, 0 }
 0x4d1   : > { %v917_v14 = vpop.f32.mrb[12].mxu0 }
 0x4d2   : > { %v1491_v15 = vpop.f32.mrb[13].mxu0  ;;  %v923_v30 = vsel %vm505_vm4, %v917_v14, -inf }
 0x4d3   : > { %v920_v16 = vpop.f32.mrb[14].mxu0  ;;  %v402_v15 = vld [vmem:[#allocation7 + $0xc] sm:$0xf] }
 0x4d4   : > { %v1492_v17 = vpop.f32.mrb[15].mxu0 }
 0x4d5   : > { %v1196_v17 = vsel %vm523_vm3, %v402_v15, 0 }
 0x4f4   : > { %513 = vadd.xlane.f32.xlu1 %v512_v18 }
 0x54c   : > { %v672_v19 = vpop.xlane.xlu1 %671 }
 0x54d   : > { %v673_v20 = vsub.f32 %v664_v9, %v672_v19 }
 0x54f   : > { %v674_v22 = vmul.f32 1.442695, %v673_v20 }
 0x550   : > { %v1034_v24 = vpop.permute.xlu1 %1033 }
 0x551   : > { %1663 = vpow2.f32 %v674_v22  ;;  %v1039_v25 = vsel %vm409_vm2, %v1034_v24, 0 }
 0x552   : > { %1506 = vmatpush3.bf16.xpose.msra.mxu0 %v1039_v25 }
 0x553   : > { %1511 = vmatprep.subr.bf16.mxu0 %v1873_v0 }
 0x559   : > { %1508 = vmatmul.mubr.msk.bf16.vlgmr.msra.gmra.mrb[16].mxu0 %vm409_vm2, %v1032_v23 }
 0x55a   : > { %1512 = vmatpush3.bf16.xpose.msra.mxu0 %v1089_v21  ;;  %1513 = vmatprep.mubr.msk.bf16.mxu0 %vm1874_vm0, %v1873_v0 }
 0x55b   : > { %v1664_v27 = vpop.eup %1663 }
 0x55c   : > { %v676_v28 = vsel %vm505_vm4, %v1664_v27, 0.0  ;;  %v680_v29 = vpack.c.bf16 %v1664_v27, %v1664_v27 }
 0x55d   : > { %677 = vadd.xlane.f32.xlu0 %v676_v28 }
 0x55e   : > { %1466 = vmatmul.mubr.msk.bf16.vlgmr.msra.gmra.mrb[4].mxu1 %vm505_vm4, %v680_v29 }
 0x55f   : > { %1471 = vmatprep.mubr.msk.bf16.mxu1 %vm1874_vm0, %v1873_v0  ;;  %1470 = vmatpush3.bf16.msra.mxu1 %v735_v34 }
 0x560   : > { %1475 = vmatprep.subr.bf16.mxu1 %v1873_v0 }
 0x561   : > { %924 = vmax.xlane.f32.xlu0 %v923_v30 }
 0x565   : > { %1514 = vmatmul.mubr.msk.bf16.vlgmr.msra.gmra.mrb[16].mxu0 %vm409_vm2, %v1082_v31 }
 0x577   : > { %934 = vrot.lane.b32.xlu0 %v2157_v32, %s1876_s13  ;;  %s1895_s13 = smov 40  }
 0x581   : > { %v514_v38 = vpop.xlane.xlu1 %513 }
 0x5ea   : > { %v678_v35 = vpop.xlane.xlu0 %677 }
 0x5eb   : > { %1665 = vrcp.f32 %v678_v35 }
 0x5ec   : > { %1667 = vrcp.f32 %v514_v38 }
 0x5ee   : > { %v925_v36 = vpop.xlane.xlu0 %924 }
 0x5ef   : > { %v926_v37 = vsub.f32 %v917_v14, %v925_v36 }
 0x5f1   : > { %v927_v39 = vmul.f32 1.442695, %v926_v37 }
 0x5f2   : > { %v935_v58 = vpop.permute.xlu0 %934 }
 0x5f3   : > { %1669 = vpow2.f32 %v927_v39  ;;  %v940_v60 = vsel %vm523_vm3, %v935_v58, 0 }
 0x5f5   : > { %v1666_v40 = vpop.eup %1665 }
 0x5f6   : > { %v1668_v50 = vpop.eup %1667 }
 0x5f7   : > { %v567_v56 = vmul.f32 %v1668_v50, %v2202_v5 }
 0x5f9   : > { %v568_v59 = vpack.c.bf16 %v567_v56, %v567_v56 }
 0x5fd   : > { %v1670_v53 = vpop.eup %1669 }
 0x5fe   : > { %v929_v57 = vsel %vm505_vm4, %v1670_v53, 0.0  ;;  %v933_v61 = vpack.c.bf16 %v1670_v53, %v1670_v53 }
 0x631   : > { %v723_v41 = vpop.f32.mrb[4].mxu1 }
 0x632   : > { %v729_v43 = vmul.f32 %v1666_v40, %v723_v41  ;;  %v1467_v44 = vpop.f32.mrb[5].mxu1 }
 0x633   : > { %v726_v45 = vpop.f32.mrb[6].mxu1 }
 0x634   : > { %v730_v46 = vpack.c.bf16 %v729_v43, %v729_v43  ;;  %v1468_v47 = vpop.f32.mrb[7].mxu1 }
 0x636   : > { %1472 = vmatmul.mubr.msk.bf16.vlgmr.msra.gmra.mrb[8].mxu1 %vm505_vm4, %v730_v46 }
 0x637   : > { %1476 = vmatpush3.bf16.msra.mxu1 %v781_v48  ;;  %1477 = vmatprep.mubr.msk.bf16.mxu1 %vm1874_vm0, %v1873_v0 }
 0x638   : > { %v1125_v49 = vpop.f32.mrb[16].mxu0  ;;  %1493 = vmatprep.subr.bf16.mxu1 %v1873_v0 }
 0x639   : > { %v1515_v51 = vpop.f32.mrb[17].mxu0  ;;  %v1131_v52 = vsel %vm505_vm4, %v1125_v49, -inf }
 0x63a   : > { %1132 = vmax.xlane.f32.xlu1 %v1131_v52  ;;  %v1128_v54 = vpop.f32.mrb[18].mxu0 }
 0x63b   : > { %v1516_v55 = vpop.f32.mrb[19].mxu0 }
 0x63e   : > { %930 = vadd.xlane.f32.xlu1 %v929_v57 }
 0x642   : > { %1478 = vmatmul.mubr.msk.bf16.vlgmr.msra.gmra.mrb[8].mxu1 %vm505_vm4, %v568_v59 }
 0x643   : > { %1494 = vmatpush3.bf16.msra.mxu1 %v940_v60  ;;  %1495 = vmatprep.mubr.msk.bf16.mxu1 %vm1874_vm0, %v1873_v0 }
 0x644   : > { %1499 = vmatprep.subr.bf16.mxu1 %v1873_v0 }
 0x64a   : > { %1496 = vmatmul.mubr.msk.bf16.vlgmr.msra.gmra.mrb[12].mxu1 %vm505_vm4, %v933_v61 }
 0x64b   : > { %1501 = vmatprep.mubr.msk.bf16.mxu1 %vm1874_vm0, %v1873_v0  ;;  %1500 = vmatpush3.bf16.msra.mxu1 %v988_v63 }
 0x64c   : > { %1517 = vmatprep.subr.bf16.mxu1 %v1873_v0 }
 0x64f   : > { %1142 = vrot.lane.b32.xlu1 %v2157_v32, %s1895_s13 }
 0x6c7   : > { %v1133_v1 = vpop.xlane.xlu1 %1132 }
 0x6c8   : > { %v1134_v2 = vsub.f32 %v1125_v49, %v1133_v1 }
 0x6ca   : > { %v1135_v3 = vmul.f32 1.442695, %v1134_v2 }
 0x6cb   : > { %v931_v6 = vpop.xlane.xlu1 %930 }
 0x6cc   : > { %1671 = vpow2.f32 %v1135_v3 }
 0x6cd   : > { %1673 = vrcp.f32 %v931_v6 }
 0x6cf   : > { %v1143_v10 = vpop.permute.xlu1 %1142 }
 0x6d0   : > { %v1148_v14 = vsel %vm523_vm3, %v1143_v10, 0 }
 0x6d6   : > { %v1672_v4 = vpop.eup %1671 }
 0x6d7   : > { %v1137_v5 = vsel %vm505_vm4, %v1672_v4, 0.0  ;;  %v1674_v7 = vpop.eup %1673  ;;  %v1141_v16 = vpack.c.bf16 %v1672_v4, %v1672_v4 }
 0x6d8   : > { %1138 = vadd.xlane.f32.xlu0 %v1137_v5 }
 0x71d   : > { %v976_v8 = vpop.f32.mrb[12].mxu1 }
 0x71e   : > { %v982_v9 = vmul.f32 %v1674_v7, %v976_v8  ;;  %v1497_v32 = vpop.f32.mrb[13].mxu1 }
 0x71f   : > { %v979_v11 = vpop.f32.mrb[14].mxu1 }
 0x720   : > { %v983_v12 = vpack.c.bf16 %v982_v9, %v982_v9  ;;  %v1498_v13 = vpop.f32.mrb[15].mxu1 }
 0x722   : > { %1502 = vmatmul.mubr.msk.bf16.vlgmr.msra.gmra.mrb[8].mxu1 %vm505_vm4, %v983_v12 }
 0x723   : > { %1518 = vmatpush3.bf16.msra.mxu1 %v1148_v14  ;;  %1519 = vmatprep.mubr.msk.bf16.mxu1 %vm1874_vm0, %v1873_v0 }
 0x724   : > { %1523 = vmatprep.subr.bf16.mxu1 %v1873_v0 }
 0x72a   : > { %1520 = vmatmul.mubr.msk.bf16.vlgmr.msra.gmra.mrb[16].mxu1 %vm505_vm4, %v1141_v16 }
 0x72b   : > { %1524 = vmatpush3.bf16.msra.mxu1 %v1196_v17  ;;  %1525 = vmatprep.mubr.msk.bf16.mxu1 %vm1874_vm0, %v1873_v0 }
 0x765   : > { %v1139_v18 = vpop.xlane.xlu0 %1138 }
 0x766   : > { %1675 = vrcp.f32 %v1139_v18 }
 0x770   : > { %v1676_v19 = vpop.eup %1675 }
 0x7fd   : > { %v1184_v20 = vpop.f32.mrb[16].mxu1 }
 0x7fe   : > { %v1190_v22 = vmul.f32 %v1676_v19, %v1184_v20  ;;  %v1521_v23 = vpop.f32.mrb[17].mxu1 }
 0x7ff   : > { %v1187_v24 = vpop.f32.mrb[18].mxu1 }
 0x800   : > { %v1191_v25 = vpack.c.bf16 %v1190_v22, %v1190_v22  ;;  %v1522_v26 = vpop.f32.mrb[19].mxu1 }
 0x802   : > { %1526 = vmatmul.mubr.msk.bf16.vlgmr.msra.gmra.mrb[8].mxu1 %vm505_vm4, %v1191_v25 }
 0x8d5   : > { %v1232_v0 = vpop.f32.mrb[8].mxu1 }
 0x8d6   : > { %1239 = vst.msk [vmem:[%s281_s10] sm:$0xff] %vm300_vm1, %v1232_v0  ;;  %v1527_v21 = vpop.f32.mrb[9].mxu1 }
 0x8d7   : > { %v1235_v27 = vpop.f32.mrb[10].mxu1 }
 0x8d8   : > { %1804 = shalt.err (!%p1801_p4)
}
 0x8d9   : > { %s1805_s6 = scalar_lea.hbm %s2258_s29, 128  ;;  %s1809_s8 = scalar_lea.hbm %s2308_s5, 256 }
 0x8da   : > { %p1806_p0 = scmp.ne.s32.totalorder %s2258_s29, %s1805_s6  ;;  %p1810_p11 = scmp.lt.u32.totalorder %s2258_s29, %s2308_s5 }
 0x8db   : > { %p1811_p13 = scmp.lt.u32.totalorder %s1809_s8, %s1805_s6  ;;  %p1813_p10 = scmp.lt.u32.totalorder %s1805_s6, %s2258_s29 }
 0x8dc   : > { %p1807_p9 = pnand %p1806_p0, %p2072_p5 }
 0x8dd   : > { %p1812_p6 = por %p1811_p13, %p1810_p11 }
 0x8de   : > { %p1808_p8 = pneg %p1807_p9 }
 0x8df   : > { %p1814_p3 = por %p1813_p10, %p1812_p6 }
 0x8e1   : > { %p1815_p7 = pnand %p1814_p3, %p1808_p8 }
 0x8e3   : > { %1818 = shalt.err (!%p1815_p7)
}
 0x8e4   : > { %1571 = dma.vmem_to_hbm [thread:$0]  (%p2072_p5), %s2260_s12, 128, %s2258_s29, %s1241_s24   ;;  %v1528_v28 = vpop.f32.mrb[11].mxu1 }
 0x8e5 PF: > { %s1266_s9 = sand.u32 1, %s1853_s18   ;;  %p2326_p12 = scmp.ne.s32.totalorder %s2313_s25, 0 }
 0x8e6   : > { %p2327_p2 = scmp.ge.s32.totalorder %s1865_s21, 2  ;;  %s1267_s10 = scalar_lea.sflag [#allocation4], %s1266_s9 }
 0x8e8   : > { %p1588_p1 = pnand %p2327_p2, %p2326_p12 }
 0x8ea   : > { %1848 = dma.done.wait (!%p1588_p1), %s1267_s10, 128  }
 0x8eb   : > { %1850 = vsyncadd (!%p1588_p1), %s1267_s10, 4294967168  ;;  %p20_p4 = scmp.ge.s32.totalorder %s2058_s14, 4   ;;  %s2328_s18 = smov %s1857_s19 }
 0x8ec   : > { %s2329_s19 = smov %s1861_s20  ;;  %s2330_s20 = smov %s2068_s28 }
 0x8ed   : > { %s2331_s21 = smov %s2058_s14  ;;  %22 = sbr.rel (!%p20_p4) target bundleno = 7 (0x7), region = 97 }
 0x8f4   :  { %1272 = vsyncpa [#allocation3], 1 }
 0x8f5   :  { %1274 = vsyncpa [#allocation3 + $0x1], 1 }
 0x8f6   :  { %1275 = vsyncpa [#allocation6], 1 }
 0x8f7   :  { %1276 = vsyncpa [#allocation9], 1 }
 0x8f8   :  { %1277 = vsyncpa [#allocation4], 1 }
 0x8f9   :  { %1279 = vsyncpa [#allocation4 + $0x1], 1 }

</bundles_post_ra>
